<compile_context>
chip_gen: v6e
topology: v6e:2x2x1
jax: 0.10.0
libtpu: 0.0.40
codegen_flags: <defaults>
</compile_context>

<pallas_src>
import jax
import jax.numpy as jnp
from jax.experimental import pallas as pl
from jax.experimental.pallas import tpu as pltpu


def _mish_kernel(x_ref, o_ref):
    xf = x_ref[...].astype(jnp.float32)
    e = jnp.exp(jnp.minimum(xf, 20.0))
    t = e * (e + 2.0)
    # Exact divide kept (approx reciprocal breaks the 1e-5 parity tolerance).
    o_ref[...] = (xf * (t / (t + 2.0))).astype(o_ref.dtype)


def _mish_math_jnp(x):
    """Tiny-tail / fallback path, same algebra as the kernel."""
    xf = x.astype(jnp.float32)
    e = jnp.exp(jnp.minimum(xf, 20.0))
    t = e * (e + 2.0)
    return (xf * (t / (t + 2.0))).astype(x.dtype)


def _device_kind():
    try:
        return jax.devices()[0].device_kind.lower()
    except Exception:
        return ""


def _default_tile_bytes():
    # v7x: 64 MiB VMEM/TC -> keep tiles at ~4 MiB.  v5e/v6e: 128 MiB -> 8 MiB.
    return 4 * 1024 * 1024 if "v7" in _device_kind() else 8 * 1024 * 1024


def _dimension_semantics():
    # Only core-parallel semantics reliably shard a grid axis across the two
    # TensorCores on v7x; plain "parallel" is the safe choice elsewhere.
    if "v7" in _device_kind():
        return (pltpu.CORE_PARALLEL,)
    return ("parallel",)


def _mish_2d(x2d, target_tile_bytes, donate_input):
    rows, lanes = x2d.shape
    itemsize = jnp.dtype(x2d.dtype).itemsize
    # Sublane multiple per dtype packing: f32->8, bf16/f16->16, int8/fp8->32.
    sub = {4: 8, 2: 16, 1: 32}.get(itemsize, 8)

    tr = max(sub, (target_tile_bytes // (lanes * itemsize)) // sub * sub)
    if tr >= rows:
        # Single block; a full-extent sublane dim is allowed even if rows % sub != 0.
        tr = rows
        grid = (1,)
    else:
        # tr is a sublane multiple; Pallas masks the partial last block, so the
        # tile size never collapses for awkward row counts.
        grid = (pl.cdiv(rows, tr),)

    tile_bytes = tr * lanes * itemsize
    # in + out, double buffered (~4x tile) plus headroom.  Keep above v5e's
    # 16 MiB scoped default and comfortably below v7x's 64 MiB physical VMEM.
    vmem_limit = min(48 * 1024 * 1024, max(32 * 1024 * 1024, 6 * tile_bytes))

    extra = {}
    if donate_input:
        # Only safe when the caller donates x (halves peak HBM footprint,
        # mainly useful on v5e's 16 GiB HBM).
        extra["input_output_aliases"] = {0: 0}

    return pl.pallas_call(
        _mish_kernel,
        out_shape=jax.ShapeDtypeStruct((rows, lanes), x2d.dtype),
        grid_spec=pltpu.PrefetchScalarGridSpec(
            num_scalar_prefetch=0,
            grid=grid,
            in_specs=[pl.BlockSpec((tr, lanes), lambda i: (i, 0))],
            out_specs=pl.BlockSpec((tr, lanes), lambda i: (i, 0)),
        ),
        compiler_params=pltpu.CompilerParams(
            dimension_semantics=_dimension_semantics(),
            vmem_limit_bytes=vmem_limit,
        ),
        **extra,
    )(x2d)


def _pick_lanes(n):
    for cand in (1024, 512, 256, 128):
        if n % cand == 0:
            return cand
    return None


def mish(x, *, target_tile_bytes=None, donate_input=False):
    """Elementwise Mish over an array of any shape/float dtype."""
    orig_shape = x.shape
    n = x.size
    if n == 0:
        return x
    if target_tile_bytes is None:
        target_tile_bytes = _default_tile_bytes()

    flat = x.reshape(-1)
    lanes = _pick_lanes(n)
    if lanes is not None:
        # Fast path: lane-dense view with zero extra HBM passes.
        out2d = _mish_2d(flat.reshape(n // lanes, lanes), target_tile_bytes, donate_input)
        return out2d.reshape(orig_shape)

    # Awkward sizes: run the kernel on the 128-aligned bulk and compute only
    # the short (<128 element) tail with plain jnp -- no full-array pad pass.
    n_bulk = (n // 128) * 128
    if n_bulk == 0:
        return _mish_math_jnp(flat).reshape(orig_shape)
    bulk_lanes = _pick_lanes(n_bulk)
    bulk_out = _mish_2d(
        flat[:n_bulk].reshape(n_bulk // bulk_lanes, bulk_lanes),
        target_tile_bytes, donate_input,
    ).reshape(-1)
    tail_out = _mish_math_jnp(flat[n_bulk:])
    return jnp.concatenate([bulk_out, tail_out]).reshape(orig_shape)


def mish_ref(x):
    # Reference uses the original log1p/exp/tanh formulation (PyTorch semantics).
    xf = x.astype(jnp.float32)
    sp = jnp.where(xf > 20.0, xf, jnp.log1p(jnp.exp(jnp.minimum(xf, 20.0))))
    return (xf * jnp.tanh(sp)).astype(x.dtype)


if __name__ == "__main__":
    key = jax.random.PRNGKey(0)

    # NCHW input, like a conv feature map (2*4*16*16 = 2048 -> zero-copy path).
    x = jax.random.normal(key, (2, 4, 16, 16), dtype=jnp.float32) * 3.0
    y = jax.block_until_ready(mish(x))
    assert y.shape == x.shape and y.dtype == x.dtype
    assert jnp.allclose(y, mish_ref(x), atol=1e-5, rtol=1e-5), "mismatch vs reference"

    # Threshold / extreme-range check (|x| up to 30, exercises the x >= 20 regime).
    x2 = jnp.linspace(-30.0, 30.0, 2048, dtype=jnp.float32).reshape(2, 4, 16, 16)
    y2 = jax.block_until_ready(mish(x2))
    assert jnp.allclose(y2, mish_ref(x2), atol=1e-5, rtol=1e-4), "mismatch at extremes"

    # bf16 activations (sublane-16 rounding path).
    xb = (jax.random.normal(key, (2, 4, 16, 16), dtype=jnp.float32) * 3.0).astype(jnp.bfloat16)
    yb = jax.block_until_ready(mish(xb))
    assert yb.dtype == jnp.bfloat16
    assert jnp.allclose(yb.astype(jnp.float32), mish_ref(xb).astype(jnp.float32),
                        atol=2e-2, rtol=2e-2), "mismatch (bf16)"

    # Tiny awkward size (<128 elems) -> pure-jnp tail-only path.
    key2 = jax.random.PRNGKey(1)
    x3 = jax.random.normal(key2, (3, 5, 7), dtype=jnp.float32) * 3.0
    y3 = jax.block_until_ready(mish(x3))
    assert jnp.allclose(y3, mish_ref(x3), atol=1e-5, rtol=1e-5), "mismatch (tiny path)"

    # Non-128-divisible size -> bulk kernel + jnp tail; tiny tile target forces a
    # multi-block grid with a masked partial last block.
    x4 = jax.random.normal(key2, (1, 3, 40, 100), dtype=jnp.float32) * 3.0
    y4 = jax.block_until_ready(mish(x4, target_tile_bytes=4096))
    assert jnp.allclose(y4, mish_ref(x4), atol=1e-5, rtol=1e-5), "mismatch (bulk+tail)"

    print("KERNEL_OK")
</pallas_src>

<mosaic_0001>
module attributes {stable_mosaic.version = 11 : i64} {
  func.func @_mish_kernel(%arg0: i32, %arg1: memref<2x1024xf32, #tpu.memory_space<vmem>>, %arg2: memref<2x1024xf32, #tpu.memory_space<vmem>>) attributes {dimension_semantics = [#tpu.dimension_semantics<parallel>], iteration_bounds = array<i64: 1>, scalar_prefetch = 0 : i64, scratch_operands = 0 : i64, tpu.core_type = #tpu.core_type<tc>, window_params = [{transform_indices = @transform_0, window_bounds = array<i64: 2, 1024>}, {transform_indices = @transform_1, window_bounds = array<i64: 2, 1024>}]} {
    %c0 = arith.constant 0 : index
    %c0_0 = arith.constant 0 : index
    %0 = vector.load %arg1[%c0, %c0_0] : memref<2x1024xf32, #tpu.memory_space<vmem>>, vector<2x1024xf32>
    %cst = arith.constant 2.000000e+01 : f32
    %1 = vector.broadcast %cst : f32 to vector<2x1024xf32>
    %2 = arith.minimumf %0, %1 : vector<2x1024xf32>
    %3 = math.exp %2 : vector<2x1024xf32>
    %cst_1 = arith.constant 2.000000e+00 : f32
    %4 = vector.broadcast %cst_1 : f32 to vector<2x1024xf32>
    %5 = arith.addf %3, %4 : vector<2x1024xf32>
    %6 = arith.mulf %3, %5 : vector<2x1024xf32>
    %cst_2 = arith.constant 2.000000e+00 : f32
    %7 = vector.broadcast %cst_2 : f32 to vector<2x1024xf32>
    %8 = arith.addf %6, %7 : vector<2x1024xf32>
    %9 = arith.divf %6, %8 : vector<2x1024xf32>
    %10 = arith.mulf %0, %9 : vector<2x1024xf32>
    %c0_3 = arith.constant 0 : index
    %c0_4 = arith.constant 0 : index
    %11 = vector.load %arg2[%c0_3, %c0_4] : memref<2x1024xf32, #tpu.memory_space<vmem>>, vector<2x1024xf32>
    tpu.vector_store %arg2[%c0_3, %c0_4], %10 {strides = array<i32>} : memref<2x1024xf32, #tpu.memory_space<vmem>>, vector<2x1024xf32>,
    return
  }
  func.func @transform_0(%arg0: i32) -> (i32, i32) {
    %c0_i32 = arith.constant 0 : i32
    %c0_i32_0 = arith.constant 0 : i32
    return %arg0, %c0_i32 : i32, i32
  }
  func.func @transform_1(%arg0: i32) -> (i32, i32) {
    %c0_i32 = arith.constant 0 : i32
    %c0_i32_0 = arith.constant 0 : i32
    return %arg0, %c0_i32 : i32, i32
  }
}

</mosaic_0001>

<bundles_post_ra>
// kernel: tpu_custom_call.1
= control target key start
LH: loop header
LB: loop body
LE: loop exit
PB: predicated region body
PF: predicated region fallthrough
CT: control target
= control target key end

     0   :  { %6 = vsyncpa [#allocation3], 0  ;;  %s130_s0 = inlined_call_operand.hbm [shape: f32[2,1024], index: 0, kind: input, shape index: {}]   ;;  %s131_s1 = inlined_call_operand.hbm [shape: f32[2,1024], index: 1, kind: output, shape index: {}]  }
   0x1   :  { %7 = vsyncpa [#allocation4], 0  ;;  %s112_s6 = smov [#allocation2]  }
   0x2   :  { %s14_s7 = sshll.u32 %s112_s6, 4  ;;  %s15_s7 = int_to_ptr.vmem [resolvable:$true] %s14_s7 }
   0x3   :  { %s76_s8 = scalar_lea.vmem %s15_s7, 256  ;;  %p81_p1 = scmp.lt.s32.totalorder %s15_s7, %s15_s7 }
   0x4   :  { %p77_p0 = scmp.ne.s32.totalorder %s15_s7, %s76_s8  ;;  %p82_p2 = scmp.lt.s32.totalorder %s76_s8, %s76_s8 }
   0x6   :  { %p83_p3 = por %p82_p2, %p81_p1 }
   0x8   :  { %p84_p4 = pnand %p83_p3, %p77_p0 }
   0xa   :  { %87 = shalt.err (!%p84_p4)
}
   0xb   :  { %17 = dma.hbm_to_vmem [thread:$0]  %s130_s0, 256, %s15_s7, [#allocation3]  }
   0xc   :  { %108 = dma.done.wait [#allocation3], 256  }
   0xd   :  { %109 = vsyncadd [#allocation3], 4294967040  ;;  %v21_v0 = vld [vmem:[#allocation2] sm:$0xff]  ;;  %v22_v1 = vld [vmem:[#allocation2 + $0x8] sm:$0xff]  ;;  %s113_s0 = smov [#allocation5]  }
   0xe   :  { %v23_v2 = vmin.f32 %v21_v0, 20.0  ;;  %v24_v3 = vmin.f32 %v22_v1, 20.0  ;;  %s49_s11 = sshll.u32 %s113_s0, 4  ;;  %s50_s11 = int_to_ptr.vmem [resolvable:$true] %s49_s11 }
   0xf   :  { %s88_s12 = scalar_lea.vmem %s50_s11, 256  ;;  %p93_p6 = scmp.lt.s32.totalorder %s50_s11, %s50_s11 }
  0x10   :  { %v25_v4 = vmul.f32 1.442695, %v23_v2  ;;  %v27_v5 = vmul.f32 1.442695, %v24_v3  ;;  %p89_p5 = scmp.ne.s32.totalorder %s50_s11, %s88_s12  ;;  %p94_p7 = scmp.lt.s32.totalorder %s88_s12, %s88_s12 }
  0x12   :  { %60 = vpow2.f32 %v25_v4  ;;  %p95_p8 = por %p94_p7, %p93_p6 }
  0x13   :  { %62 = vpow2.f32 %v27_v5 }
  0x14   :  { %p96_p9 = pnand %p95_p8, %p89_p5 }
  0x1f   :  { %v61_v6 = vpop.eup %60 }
  0x20   :  { %v63_v7 = vpop.eup %62  ;;  %v29_v8 = vadd.f32 2.0, %v61_v6 }
  0x21   :  { %v30_v9 = vadd.f32 2.0, %v63_v7 }
  0x22   :  { %v31_v10 = vmul.f32 %v61_v6, %v29_v8 }
  0x23   :  { %v32_v11 = vmul.f32 %v63_v7, %v30_v9 }
  0x24   :  { %v33_v12 = vadd.f32 2.0, %v31_v10 }
  0x25   :  { %v34_v13 = vadd.f32 2.0, %v32_v11 }
  0x26   :  { %64 = vrcp.f32 %v33_v12 }
  0x27   :  { %66 = vrcp.f32 %v34_v13 }
  0x33   :  { %v65_v14 = vpop.eup %64 }
  0x34   :  { %v67_v15 = vpop.eup %66  ;;  %v36_v16 = vmul.f32 %v65_v14, %v31_v10 }
  0x35   :  { %v38_v17 = vmul.f32 %v67_v15, %v32_v11 }
  0x36   :  { %v39_v18 = vmul.f32 %v36_v16, %v21_v0 }
  0x37   :  { %v40_v19 = vmul.f32 %v38_v17, %v22_v1 }
  0x38   :  { %41 = vst [vmem:[#allocation5] sm:$0xff] %v39_v18 }
  0x39   :  { %42 = vst [vmem:[#allocation5 + $0x8] sm:$0xff] %v40_v19 }
  0x3a   :  { %99 = shalt.err (!%p96_p9)
}
  0x3b   :  { %52 = dma.vmem_to_hbm [thread:$0]  %s50_s11, 256, %s131_s1, [#allocation4]  }
  0x3c   :  { %110 = dma.done.wait [#allocation4], 256  }
  0x3d   :  { %111 = vsyncadd [#allocation4], 4294967040 }
  0x3e   :  { %56 = vsyncpa [#allocation3], 1 }
  0x3f   :  { %57 = vsyncpa [#allocation4], 1 }

</bundles_post_ra>
